<compile_context>
chip_gen: v7x
topology: tpu7x:2x2x1
jax: 0.10.0
libtpu: 0.0.40
codegen_flags: <defaults>
</compile_context>

<pallas_src>
import math
import jax
import jax.numpy as jnp
from jax.experimental import pallas as pl
from jax.experimental.pallas import tpu as pltpu


def _round_up(x, m):
    return ((x + m - 1) // m) * m


# --------------------------------------------------------------------------
# kernels
# --------------------------------------------------------------------------

def _log_softmax(logits):
    m = jnp.max(logits, axis=-1, keepdims=True)
    shifted = logits - m
    lse = jnp.log(jnp.sum(jnp.exp(shifted), axis=-1, keepdims=True))
    return shifted - lse


def _classifier_single_kernel(x_ref, w_ref, b_ref, o_ref):
    # x: (TM, H) any dtype, w: (H, O_pad) bf16/f32, b: (1, O_pad) f32
    x = x_ref[...].astype(w_ref.dtype)
    logits = jnp.dot(x, w_ref[...], preferred_element_type=jnp.float32) + b_ref[...]
    o_ref[...] = _log_softmax(logits)


def _classifier_mid_kernel(x_ref, w1_ref, b1_ref, w2_ref, b2_ref, o_ref):
    # Linear -> ReLU -> Linear -> log_softmax, f32 accumulation throughout.
    x = x_ref[...].astype(w1_ref.dtype)
    hid = jnp.dot(x, w1_ref[...], preferred_element_type=jnp.float32) + b1_ref[...]
    relu = jnp.maximum(hid, 0.0).astype(w2_ref.dtype)
    logits = jnp.dot(relu, w2_ref[...], preferred_element_type=jnp.float32) + b2_ref[...]
    o_ref[...] = _log_softmax(logits)


def _logits_stats_kernel(x_ref, w_ref, b_ref, logits_ref, lse_ref, m_sc, l_sc):
    # Weight-streaming path: grid = (row_blocks, o_blocks), o axis "arbitrary".
    # Writes raw logits per (row, O) tile and accumulates a per-row online
    # max / sum-exp; the logsumexp is emitted on the last O step.
    j = pl.program_id(1)

    @pl.when(j == 0)
    def _():
        m_sc[...] = jnp.full_like(m_sc, -jnp.inf)
        l_sc[...] = jnp.zeros_like(l_sc)

    x = x_ref[...].astype(w_ref.dtype)
    logits = jnp.dot(x, w_ref[...], preferred_element_type=jnp.float32) + b_ref[...]
    logits_ref[...] = logits

    m_prev = m_sc[...]
    m_new = jnp.maximum(m_prev, jnp.max(logits, axis=-1, keepdims=True))
    l_sc[...] = l_sc[...] * jnp.exp(m_prev - m_new) + jnp.sum(
        jnp.exp(logits - m_new), axis=-1, keepdims=True)
    m_sc[...] = m_new

    @pl.when(j == pl.num_programs(1) - 1)
    def _():
        lse_ref[...] = m_sc[...] + jnp.log(l_sc[...])


def _normalize_kernel(logits_ref, lse_ref, o_ref):
    o_ref[...] = logits_ref[...] - lse_ref[...]


# --------------------------------------------------------------------------
# parameter init / prep (hoisted out of the forward path)
# --------------------------------------------------------------------------

def init_classifier_params(key, hidden_size, output_size, mid_layer_size=0):
    """Matches Classifier.__init__: uniform(-stdv, stdv) weights, zero bias."""
    if mid_layer_size == 0:
        stdv = 1.0 / math.sqrt(hidden_size)
        w = jax.random.uniform(key, (output_size, hidden_size), jnp.float32, -stdv, stdv)
        b = jnp.zeros((output_size,), jnp.float32)
        return {"w": w, "b": b}
    k1, k2 = jax.random.split(key)
    stdv1 = 1.0 / math.sqrt(hidden_size)
    stdv2 = 1.0 / math.sqrt(mid_layer_size)
    w1 = jax.random.uniform(k1, (mid_layer_size, hidden_size), jnp.float32, -stdv1, stdv1)
    b1 = jnp.zeros((mid_layer_size,), jnp.float32)
    w2 = jax.random.uniform(k2, (output_size, mid_layer_size), jnp.float32, -stdv2, stdv2)
    b2 = jnp.zeros((output_size,), jnp.float32)
    return {"w1": w1, "b1": b1, "w2": w2, "b2": b2}


def prepare_classifier_params(params, *, mid_layer_size=0, fix_norm=False,
                              compute_dtype=jnp.bfloat16, pad_output_to=128):
    """One-time prep: fix_norm normalize (f32), transpose to (in, out) layout,
    cast weights to the MXU compute dtype, pad output dim to a lane-dense
    multiple of `pad_output_to` (padded columns get zero weight + -inf bias so
    they drop out of the log-softmax). Biases stay f32."""
    if mid_layer_size == 0:
        w = params["w"].astype(jnp.float32)          # (O, H) PyTorch layout
        b = params["b"].astype(jnp.float32)          # (O,)
        if fix_norm:                                 # F.normalize(dim=-1)
            norm = jnp.sqrt(jnp.sum(w * w, axis=-1, keepdims=True))
            w = w / jnp.maximum(norm, 1e-12)
        O, H = w.shape
        O_pad = _round_up(max(O, 1), pad_output_to)
        wt = jnp.zeros((H, O_pad), compute_dtype).at[:, :O].set(
            jnp.transpose(w).astype(compute_dtype))
        b_row = jnp.full((1, O_pad), -jnp.inf, jnp.float32).at[0, :O].set(b)
        return {"wt": wt, "b": b_row, "out_features": O}

    if fix_norm:
        raise NotImplementedError  # matches the PyTorch module
    w1 = params["w1"].astype(jnp.float32)            # (M, H)
    b1 = params["b1"].astype(jnp.float32)
    w2 = params["w2"].astype(jnp.float32)            # (O, M)
    b2 = params["b2"].astype(jnp.float32)
    M, H = w1.shape
    O = w2.shape[0]
    O_pad = _round_up(max(O, 1), pad_output_to)
    w1t = jnp.transpose(w1).astype(compute_dtype)    # (H, M)
    b1_row = b1.reshape(1, M)
    w2t = jnp.zeros((M, O_pad), compute_dtype).at[:, :O].set(
        jnp.transpose(w2).astype(compute_dtype))
    b2_row = jnp.full((1, O_pad), -jnp.inf, jnp.float32).at[0, :O].set(b2)
    return {"w1t": w1t, "b1": b1_row, "w2t": w2t, "b2": b2_row, "out_features": O}


# --------------------------------------------------------------------------
# forward
# --------------------------------------------------------------------------

def classifier_forward(prepared, output_dicts, *, input_name="context",
                       mid_layer_size=0, block_rows=256, o_block=None):
    """Forward pass of Classifier. grad_reverse is identity in the forward.
    `o_block` (multiple of 128): stream the (H, O) weight in O tiles with an
    online log-softmax -- use for vocab-sized output layers."""
    if input_name == "context_avgpool":
        x = jnp.mean(output_dicts["context"], axis=0, keepdims=True)
    else:
        x = output_dicts[input_name]

    lead = x.shape[:-1]
    H = x.shape[-1]
    x2 = x.reshape(-1, H)
    n = x2.shape[0]
    O = prepared["out_features"]

    # Row tile: big (MXU-friendly) but never larger than the array; ragged
    # last block is handled by Pallas, so no wrapper-side padding copy.
    tm = min(_round_up(block_rows, 8), _round_up(n, 8))
    if tm > n:
        tm = n  # tiny inputs: single full-extent block
    num_row_blocks = pl.cdiv(n, tm)

    if mid_layer_size == 0:
        wt, b = prepared["wt"], prepared["b"]
        O_pad = wt.shape[1]

        if o_block is None:
            # Weight-resident fast path (small / medium O).
            out = pl.pallas_call(
                _classifier_single_kernel,
                out_shape=jax.ShapeDtypeStruct((n, O_pad), jnp.float32),
                grid_spec=pltpu.PrefetchScalarGridSpec(
                    num_scalar_prefetch=0,
                    grid=(num_row_blocks,),
                    in_specs=[
                        pl.BlockSpec((tm, H), lambda i: (i, 0)),
                        pl.BlockSpec((H, O_pad), lambda i: (0, 0)),
                        pl.BlockSpec((1, O_pad), lambda i: (0, 0)),
                    ],
                    out_specs=pl.BlockSpec((tm, O_pad), lambda i: (i, 0)),
                ),
                compiler_params=pltpu.CompilerParams(
                    dimension_semantics=("parallel",)),
            )(x2, wt, b)
        else:
            # Weight-streaming path with online log-softmax (large O).
            to = math.gcd(O_pad, _round_up(o_block, 128))
            num_o_blocks = O_pad // to
            logits, lse = pl.pallas_call(
                _logits_stats_kernel,
                out_shape=(jax.ShapeDtypeStruct((n, O_pad), jnp.float32),
                           jax.ShapeDtypeStruct((n, 1), jnp.float32)),
                grid_spec=pltpu.PrefetchScalarGridSpec(
                    num_scalar_prefetch=0,
                    grid=(num_row_blocks, num_o_blocks),
                    in_specs=[
                        pl.BlockSpec((tm, H), lambda i, j: (i, 0)),
                        pl.BlockSpec((H, to), lambda i, j: (0, j)),
                        pl.BlockSpec((1, to), lambda i, j: (0, j)),
                    ],
                    out_specs=[
                        pl.BlockSpec((tm, to), lambda i, j: (i, j)),
                        pl.BlockSpec((tm, 1), lambda i, j: (i, 0)),
                    ],
                    scratch_shapes=[pltpu.VMEM((tm, 1), jnp.float32),
                                    pltpu.VMEM((tm, 1), jnp.float32)],
                ),
                compiler_params=pltpu.CompilerParams(
                    dimension_semantics=("parallel", "arbitrary")),
            )(x2, wt, b)
            out = pl.pallas_call(
                _normalize_kernel,
                out_shape=jax.ShapeDtypeStruct((n, O_pad), jnp.float32),
                grid_spec=pltpu.PrefetchScalarGridSpec(
                    num_scalar_prefetch=0,
                    grid=(num_row_blocks, num_o_blocks),
                    in_specs=[
                        pl.BlockSpec((tm, to), lambda i, j: (i, j)),
                        pl.BlockSpec((tm, 1), lambda i, j: (i, 0)),
                    ],
                    out_specs=pl.BlockSpec((tm, to), lambda i, j: (i, j)),
                ),
                compiler_params=pltpu.CompilerParams(
                    dimension_semantics=("parallel", "parallel")),
            )(logits, lse)
    else:
        # Mid-layer head (typically small M and O): keep both weights resident.
        w1t, b1 = prepared["w1t"], prepared["b1"]
        w2t, b2 = prepared["w2t"], prepared["b2"]
        M = w1t.shape[1]
        O_pad = w2t.shape[1]
        out = pl.pallas_call(
            _classifier_mid_kernel,
            out_shape=jax.ShapeDtypeStruct((n, O_pad), jnp.float32),
            grid_spec=pltpu.PrefetchScalarGridSpec(
                num_scalar_prefetch=0,
                grid=(num_row_blocks,),
                in_specs=[
                    pl.BlockSpec((tm, H), lambda i: (i, 0)),
                    pl.BlockSpec((H, M), lambda i: (0, 0)),
                    pl.BlockSpec((1, M), lambda i: (0, 0)),
                    pl.BlockSpec((M, O_pad), lambda i: (0, 0)),
                    pl.BlockSpec((1, O_pad), lambda i: (0, 0)),
                ],
                out_specs=pl.BlockSpec((tm, O_pad), lambda i: (i, 0)),
            ),
            compiler_params=pltpu.CompilerParams(
                dimension_semantics=("parallel",)),
        )(x2, w1t, b1, w2t, b2)

    if out.shape[1] != O:
        out = out[:, :O]          # drop lane-padding columns
    return out.reshape(lead + (O,))


# --------------------------------------------------------------------------
# pure-JAX reference mirroring the PyTorch forward (optionally in bf16 compute)
# --------------------------------------------------------------------------

def _reference_forward(params, output_dicts, *, input_name="context",
                       mid_layer_size=0, fix_norm=False,
                       compute_dtype=jnp.float32):
    if input_name == "context_avgpool":
        x = jnp.mean(output_dicts["context"], axis=0, keepdims=True)
    else:
        x = output_dicts[input_name]
    xc = x.astype(compute_dtype)
    if mid_layer_size == 0:
        w = params["w"].astype(jnp.float32)
        b = params["b"].astype(jnp.float32)
        if fix_norm:
            norm = jnp.sqrt(jnp.sum(w * w, axis=-1, keepdims=True))
            w = w / jnp.maximum(norm, 1e-12)
        logits = jnp.dot(xc, w.astype(compute_dtype).T,
                         preferred_element_type=jnp.float32) + b
    else:
        w1 = params["w1"].astype(compute_dtype)
        b1 = params["b1"].astype(jnp.float32)
        w2 = params["w2"].astype(compute_dtype)
        b2 = params["b2"].astype(jnp.float32)
        h = jnp.dot(xc, w1.T, preferred_element_type=jnp.float32) + b1
        h = jnp.maximum(h, 0.0).astype(compute_dtype)
        logits = jnp.dot(h, w2.T, preferred_element_type=jnp.float32) + b2
    m = jnp.max(logits, axis=-1, keepdims=True)
    shifted = logits - m
    return shifted - jnp.log(jnp.sum(jnp.exp(shifted), axis=-1, keepdims=True))


if __name__ == "__main__":
    T, B, H, O, M = 8, 2, 32, 10, 32
    key = jax.random.PRNGKey(0)
    k_ctx, k_p1, k_p2, k_p3 = jax.random.split(key, 4)

    context = jax.random.normal(k_ctx, (T, B, H), jnp.float32)  # (seq, batch, hidden)
    output_dicts = {"context": context, "hidden": context}

    # --- path 1: single linear head, bf16 MXU compute ---
    params0 = init_classifier_params(k_p1, H, O, mid_layer_size=0)
    prep0 = prepare_classifier_params(params0, mid_layer_size=0, fix_norm=False)
    out0 = classifier_forward(prep0, output_dicts, input_name="context",
                              mid_layer_size=0)
    jax.block_until_ready(out0)
    ref0 = _reference_forward(params0, output_dicts, mid_layer_size=0,
                              compute_dtype=jnp.bfloat16)
    ref0_f32 = _reference_forward(params0, output_dicts, mid_layer_size=0,
                                  compute_dtype=jnp.float32)
    assert out0.shape == (T, B, O) and out0.dtype == jnp.float32
    assert jnp.allclose(out0, ref0, atol=3e-5, rtol=3e-5)
    assert jnp.allclose(out0, ref0_f32, atol=5e-2, rtol=0)

    # --- path 1b: fix_norm=True (folded into parameter prep) ---
    prep0n = prepare_classifier_params(params0, mid_layer_size=0, fix_norm=True)
    out0n = classifier_forward(prep0n, output_dicts, mid_layer_size=0)
    jax.block_until_ready(out0n)
    ref0n = _reference_forward(params0, output_dicts, mid_layer_size=0,
                               fix_norm=True, compute_dtype=jnp.bfloat16)
    assert jnp.allclose(out0n, ref0n, atol=3e-5, rtol=3e-5)

    # --- path 1c: f32 compute exactly matches the PyTorch-semantics reference ---
    prep0f = prepare_classifier_params(params0, mid_layer_size=0,
                                       compute_dtype=jnp.float32)
    out0f = classifier_forward(prep0f, output_dicts, mid_layer_size=0)
    jax.block_until_ready(out0f)
    assert jnp.allclose(out0f, ref0_f32, atol=1e-5, rtol=1e-5)

    # --- path 2: mid-layer head (Linear -> ReLU -> Linear) ---
    params1 = init_classifier_params(k_p2, H, O, mid_layer_size=M)
    prep1 = prepare_classifier_params(params1, mid_layer_size=M)
    out1 = classifier_forward(prep1, output_dicts, mid_layer_size=M)
    jax.block_until_ready(out1)
    ref1 = _reference_forward(params1, output_dicts, mid_layer_size=M,
                              compute_dtype=jnp.bfloat16)
    assert out1.shape == (T, B, O)
    assert jnp.allclose(out1, ref1, atol=3e-5, rtol=3e-5)

    # --- path 3: input_name == 'context_avgpool' (mean over time dim in glue) ---
    out2 = classifier_forward(prep0, output_dicts, input_name="context_avgpool")
    jax.block_until_ready(out2)
    assert out2.shape == (1, B, O)

    # --- path 4: large-O weight-streaming path with online log-softmax ---
    O_big = 300
    params2 = init_classifier_params(k_p3, H, O_big, mid_layer_size=0)
    prep2 = prepare_classifier_params(params2, mid_layer_size=0)
    out3 = classifier_forward(prep2, output_dicts, mid_layer_size=0,
                              block_rows=8, o_block=128)   # 2 row blocks x 3 O tiles
    jax.block_until_ready(out3)
    ref3 = _reference_forward(params2, output_dicts, mid_layer_size=0,
                              compute_dtype=jnp.bfloat16)
    assert out3.shape == (T, B, O_big)
    assert jnp.allclose(out3, ref3, atol=1e-4, rtol=1e-4)

    print("KERNEL_OK")
</pallas_src>

<mosaic_0001>
module attributes {stable_mosaic.version = 11 : i64} {
  func.func @_classifier_single_kernel(%arg0: i32, %arg1: memref<16x32xf32, #tpu.memory_space<vmem>>, %arg2: memref<32x128xbf16, #tpu.memory_space<vmem>>, %arg3: memref<1x128xf32, #tpu.memory_space<vmem>>, %arg4: memref<16x128xf32, #tpu.memory_space<vmem>>) attributes {dimension_semantics = [#tpu.dimension_semantics<parallel>], iteration_bounds = array<i64: 1>, scalar_prefetch = 0 : i64, scratch_operands = 0 : i64, tpu.core_type = #tpu.core_type<tc>, window_params = [{transform_indices = @transform_0, window_bounds = array<i64: 16, 32>}, {pipeline_mode = #tpu.pipeline_mode<synchronous>, transform_indices = @transform_1, window_bounds = array<i64: 32, 128>}, {pipeline_mode = #tpu.pipeline_mode<synchronous>, transform_indices = @transform_2, window_bounds = array<i64: 1, 128>}, {transform_indices = @transform_3, window_bounds = array<i64: 16, 128>}]} {
    %c0 = arith.constant 0 : index
    %c0_0 = arith.constant 0 : index
    %0 = vector.load %arg1[%c0, %c0_0] : memref<16x32xf32, #tpu.memory_space<vmem>>, vector<16x32xf32>
    %1 = arith.truncf %0 : vector<16x32xf32> to vector<16x32xbf16>
    %c0_1 = arith.constant 0 : index
    %c0_2 = arith.constant 0 : index
    %2 = vector.load %arg2[%c0_1, %c0_2] : memref<32x128xbf16, #tpu.memory_space<vmem>>, vector<32x128xbf16>
    %cst = arith.constant dense<0.000000e+00> : vector<16x128xf32>
    %3 = tpu.matmul %1, %2, %cst {dimension_numbers = #tpu.dot_dimension_numbers<[1], [0], [0], [1], [0, 0, 1, 1], [], []>} : vector<16x32xbf16>, vector<32x128xbf16>, vector<16x128xf32> -> vector<16x128xf32>
    %c0_3 = arith.constant 0 : index
    %c0_4 = arith.constant 0 : index
    %4 = vector.load %arg3[%c0_3, %c0_4] : memref<1x128xf32, #tpu.memory_space<vmem>>, vector<1x128xf32>
    %5 = vector.broadcast %4 : vector<1x128xf32> to vector<16x128xf32>
    %6 = arith.addf %3, %5 : vector<16x128xf32>
    %cst_5 = arith.constant dense<0xFF800000> : vector<16xf32>
    %7 = vector.multi_reduction <maximumf>, %6, %cst_5 [1] : vector<16x128xf32> to vector<16xf32>
    %8 = vector.shape_cast %7 : vector<16xf32> to vector<16x1xf32>
    %9 = vector.broadcast %8 : vector<16x1xf32> to vector<16x128xf32>
    %10 = arith.subf %6, %9 : vector<16x128xf32>
    %11 = math.exp %10 : vector<16x128xf32>
    %cst_6 = arith.constant dense<0.000000e+00> : vector<16xf32>
    %12 = vector.multi_reduction <add>, %11, %cst_6 [1] : vector<16x128xf32> to vector<16xf32>
    %13 = vector.shape_cast %12 : vector<16xf32> to vector<16x1xf32>
    %14 = math.log %13 : vector<16x1xf32>
    %15 = vector.broadcast %14 : vector<16x1xf32> to vector<16x128xf32>
    %16 = arith.subf %10, %15 : vector<16x128xf32>
    %c0_7 = arith.constant 0 : index
    %c0_8 = arith.constant 0 : index
    %17 = vector.load %arg4[%c0_7, %c0_8] : memref<16x128xf32, #tpu.memory_space<vmem>>, vector<16x128xf32>
    tpu.vector_store %arg4[%c0_7, %c0_8], %16 {strides = array<i32>} : memref<16x128xf32, #tpu.memory_space<vmem>>, vector<16x128xf32>,
    return
  }
  func.func @transform_0(%arg0: i32) -> (i32, i32) {
    %c0_i32 = arith.constant 0 : i32
    %c0_i32_0 = arith.constant 0 : i32
    return %arg0, %c0_i32 : i32, i32
  }
  func.func @transform_1(%arg0: i32) -> (i32, i32) {
    %c0_i32 = arith.constant 0 : i32
    %c0_i32_0 = arith.constant 0 : i32
    %c0_i32_1 = arith.constant 0 : i32
    return %c0_i32, %c0_i32_0 : i32, i32
  }
  func.func @transform_2(%arg0: i32) -> (i32, i32) {
    %c0_i32 = arith.constant 0 : i32
    %c0_i32_0 = arith.constant 0 : i32
    %c0_i32_1 = arith.constant 0 : i32
    return %c0_i32, %c0_i32_0 : i32, i32
  }
  func.func @transform_3(%arg0: i32) -> (i32, i32) {
    %c0_i32 = arith.constant 0 : i32
    %c0_i32_0 = arith.constant 0 : i32
    return %arg0, %c0_i32 : i32, i32
  }
}

</mosaic_0001>

<bundles_post_ra>
// kernel: tpu_custom_call.1
= control target key start
LH: loop header
LB: loop body
LE: loop exit
PB: predicated region body
PF: predicated region fallthrough
CT: control target
= control target key end

     0   :  { %8 = vsyncpa [#allocation3], 0  ;;  %s335_s0 = inlined_call_operand.hbm [shape: f32[16,32], index: 0, kind: input, shape index: {}]   ;;  %s336_s1 = inlined_call_operand.hbm [shape: bf16[32,128], index: 1, kind: input, shape index: {}]   ;;  %s337_s2 = inlined_call_operand.vmem [shape: f32[1,128], index: 2, kind: input, shape index: {}]   ;;  %s338_s3 = inlined_call_operand.hbm [shape: f32[16,128], index: 3, kind: output, shape index: {}]  }
   0x1   :  { %9 = vsyncpa [#allocation6], 0 }
   0x2   :  { %10 = vsyncpa [#allocation4], 0  ;;  %s261_s12 = smov [#allocation2]   ;;  %s189_s16 = scalar_lea.hbm %s335_s0, 256 }
   0x3   :  { %s16_s13 = sshll.u32 %s261_s12, 4  ;;  %p190_p0 = scmp.ne.s32.totalorder %s335_s0, %s189_s16  ;;  %s17_s13 = int_to_ptr.vmem [resolvable:$true] %s16_s13 }
   0x4   :  { %p193_p1 = scmp.lt.u32.totalorder %s189_s16, %s335_s0 }
   0x6   :  { %p195_p2 = pnand %p193_p1, %p190_p0 }
   0x8   :  { %198 = shalt.err (!%p195_p2)
}
   0x9   :  { %s199_s21 = scalar_lea.vmem %s17_s13, 256  ;;  %p204_p4 = scmp.lt.s32.totalorder %s17_s13, %s17_s13 }
   0xa   :  { %p200_p3 = scmp.ne.s32.totalorder %s17_s13, %s199_s21  ;;  %p205_p5 = scmp.lt.s32.totalorder %s199_s21, %s199_s21 }
   0xc   :  { %p206_p6 = por %p205_p5, %p204_p4 }
   0xe   :  { %p207_p7 = pnand %p206_p6, %p200_p3 }
  0x10   :  { %210 = shalt.err (!%p207_p7)
}
  0x11   :  { %s262_s22 = smov 128   ;;  %s263_s23 = smov 8  }
  0x12   :  { %22 = dma.hbm_to_vmem [thread:$0]  %s335_s0, 256, %s17_s13, [#allocation3], %s262_s22, %s262_s22, %s263_s23  }
  0x13   :  { %s264_s26 = smov [#allocation5]   ;;  %s211_s30 = scalar_lea.hbm %s336_s1, 256 }
  0x14   :  { %s28_s27 = sshll.u32 %s264_s26, 4  ;;  %p212_p8 = scmp.ne.s32.totalorder %s336_s1, %s211_s30  ;;  %s29_s27 = int_to_ptr.vmem [resolvable:$true] %s28_s27 }
  0x15   :  { %p215_p9 = scmp.lt.u32.totalorder %s211_s30, %s336_s1 }
  0x17   :  { %p217_p10 = pnand %p215_p9, %p212_p8 }
  0x19   :  { %220 = shalt.err (!%p217_p10)
}
  0x1a   :  { %s221_s8 = scalar_lea.vmem %s29_s27, 256  ;;  %p226_p12 = scmp.lt.s32.totalorder %s29_s27, %s29_s27 }
  0x1b   :  { %p222_p11 = scmp.ne.s32.totalorder %s29_s27, %s221_s8  ;;  %p227_p13 = scmp.lt.s32.totalorder %s221_s8, %s221_s8 }
  0x1d   :  { %p228_p0 = por %p227_p13, %p226_p12 }
  0x1f   :  { %p229_p1 = pnand %p228_p0, %p222_p11 }
  0x21   :  { %232 = shalt.err (!%p229_p1)
}
  0x22   :  { %s265_s0 = smov 64   ;;  %s266_s9 = smov 4  }
  0x23   :  { %34 = dma.hbm_to_vmem [thread:$0]  %s336_s1, 256, %s29_s27, [#allocation6], %s265_s0, %s265_s0, %s266_s9  }
  0x24   :  { %255 = dma.done.wait [#allocation3], 256  }
  0x25   :  { %256 = vsyncadd [#allocation3], 4294967040 }
  0x26   :  { %257 = dma.done.wait [#allocation6], 256  }
  0x27   :  { %258 = vsyncadd [#allocation6], 4294967040  ;;  %v267_v0 = vmov 0.0   ;;  %vm268_vm0 = vmmov 0   ;;  %v179_v1 = vld [vmem:[#allocation5] sm:$0xff]   ;;  %v180_v2 = vld [vmem:[#allocation5 + $0x8] sm:$0xff]  }
  0x28   :  { %162 = vmatprep.subr.bf16.mxu0 %v267_v0  ;;  %166 = vmatprep.mubr.msk.bf16.mxu0 %vm268_vm0, %v267_v0  ;;  %v44_v3 = vld [vmem:[#allocation2] sm:$0xff]  ;;  %v45_v4 = vld [vmem:[#allocation2 + $0x8] sm:$0xff]  ;;  %vm70_vm1 = vcmask 261120  }
  0x29   :  { %163 = vmatpush3.bf16.msra.mxu0 %v179_v1  ;;  %v46_v5 = vpack.c.bf16 %v45_v4, %v44_v3  ;;  %v155_v6 = vld [vmem:[%s337_s2] ss:$0 sm:$0xff]  ;;  %s269_s2 = smov [#allocation7]  }
  0x2a   :  { %164 = vmatprep.subr.bf16.mxu0 %v267_v0  ;;  %s142_s13 = sshll.u32 %s269_s2, 4  ;;  %s143_s13 = int_to_ptr.vmem [resolvable:$true] %s142_s13 }
  0x2b   :  { %s233_s14 = scalar_lea.vmem %s143_s13, 256  ;;  %p238_p3 = scmp.lt.s32.totalorder %s143_s13, %s143_s13 }
  0x2c   :  { %p234_p2 = scmp.ne.s32.totalorder %s143_s13, %s233_s14  ;;  %p239_p4 = scmp.lt.s32.totalorder %s233_s14, %s233_s14 }
  0x2d   :  { %165 = vmatpush3.bf16.msra.mxu0 %v180_v2 }
  0x2e   :  { %p240_p5 = por %p239_p4, %p238_p3 }
  0x30   :  { %167 = vmatmul.mubr.msk.bf16.vlgmr.msra.gmra.mrb[0].mxu0 %vm70_vm1, %v46_v5  ;;  %p241_p6 = pnand %p240_p5, %p234_p2 }
 0x103   :  { %v108_v7 = vpop.f32.mrb[0].mxu0 }
 0x104   :  { %v109_v8 = vadd.f32 %v155_v6, %v108_v7  ;;  %v168_v9 = vpop.f32.mrb[1].mxu0 }
 0x105   :  { %v111_v10 = vpop.f32.mrb[2].mxu0 }
 0x106   :  { %115 = vmax.xlane.f32.xlu0 %v109_v8  ;;  %v169_v11 = vpop.f32.mrb[3].mxu0  ;;  %v112_v12 = vadd.f32 %v155_v6, %v111_v10 }
 0x10a   :  { %117 = vmax.xlane.f32.xlu0 %v112_v12 }
 0x193   :  { %v116_v13 = vpop.xlane.xlu0 %115 }
 0x194   :  { %v119_v14 = vsub.f32 %v109_v8, %v116_v13 }
 0x196   :  { %v121_v15 = vmul.f32 1.442695, %v119_v14 }
 0x197   :  { %v118_v16 = vpop.xlane.xlu0 %117 }
 0x198   :  { %v120_v17 = vsub.f32 %v112_v12, %v118_v16  ;;  %181 = vpow2.f32 %v121_v15 }
 0x19a   :  { %v123_v18 = vmul.f32 1.442695, %v120_v17 }
 0x19c   :  { %183 = vpow2.f32 %v123_v18 }
 0x1a2   :  { %v182_v19 = vpop.eup %181 }
 0x1a3   :  { %125 = vadd.xlane.f32.xlu1 %v182_v19 }
 0x1a6   :  { %v184_v20 = vpop.eup %183 }
 0x1a7   :  { %127 = vadd.xlane.f32.xlu1 %v184_v20 }
 0x230   :  { %v126_v21 = vpop.xlane.xlu1 %125 }
 0x231   :  { %185 = vlog2.f32 %v126_v21 }
 0x234   :  { %v128_v22 = vpop.xlane.xlu1 %127 }
 0x235   :  { %187 = vlog2.f32 %v128_v22 }
 0x23b   :  { %v186_v23 = vpop.eup %185 }
 0x23c   :  { %v130_v24 = vmul.f32 0.6931472, %v186_v23 }
 0x23e   :  { %v133_v25 = vsub.f32 %v119_v14, %v130_v24 }
 0x23f   :  { %v188_v26 = vpop.eup %187 }
 0x240   :  { %135 = vst [vmem:[#allocation7] sm:$0xff] %v133_v25  ;;  %v132_v27 = vmul.f32 0.6931472, %v188_v26 }
 0x242   :  { %v134_v28 = vsub.f32 %v120_v17, %v132_v27 }
 0x244   :  { %136 = vst [vmem:[#allocation7 + $0x8] sm:$0xff] %v134_v28 }
 0x245   :  { %244 = shalt.err (!%p241_p6)
}
 0x246   :  { %s245_s17 = scalar_lea.hbm %s338_s3, 256 }
 0x247   :  { %p246_p7 = scmp.ne.s32.totalorder %s338_s3, %s245_s17  ;;  %p249_p8 = scmp.lt.u32.totalorder %s245_s17, %s338_s3 }
 0x249   :  { %p251_p9 = pnand %p249_p8, %p246_p7 }
 0x24b   :  { %254 = shalt.err (!%p251_p9)
}
 0x24c   :  { %148 = dma.vmem_to_hbm [thread:$0]  %s143_s13, 256, %s338_s3, [#allocation4], %s262_s22, %s262_s22, %s263_s23  }
 0x24d   :  { %259 = dma.done.wait [#allocation4], 256  }
 0x24e   :  { %260 = vsyncadd [#allocation4], 4294967040 }
 0x24f   :  { %152 = vsyncpa [#allocation3], 1 }
 0x250   :  { %153 = vsyncpa [#allocation6], 1 }
 0x251   :  { %154 = vsyncpa [#allocation4], 1 }

</bundles_post_ra>
